<compile_context>
chip_gen: v7x
topology: tpu7x:2x2x1
jax: 0.10.0
libtpu: 0.0.40
codegen_flags: <defaults>
</compile_context>

<pallas_src>
import jax
import jax.numpy as jnp
from jax.experimental import pallas as pl
from jax.experimental.pallas import tpu as pltpu

# ---- small, deterministic problem sizes ----
B, S = 2, 8                 # batch, sequence
D_IN = 128                  # dim_input  (lane-dense: multiple of 128)
DIMS = (256, 128)           # config['dims'] -> hidden, output (both lane-dense)
N = B * S                   # flattened rows fed through the MLP


def ffnn_kernel(x_ref, *refs):
    """x_ref: (TM, D_IN); refs = (w1, b1, w2, b2, ..., o_ref)."""
    o_ref = refs[-1]
    wb = refs[:-1]
    h = x_ref[...].astype(jnp.float32)
    for li in range(len(wb) // 2):
        w_ref, b_ref = wb[2 * li], wb[2 * li + 1]
        # nn.Linear (weights stored pre-transposed as (d_in, d_out)) + bias  -> MXU
        h = jnp.dot(h, w_ref[...], preferred_element_type=jnp.float32) + b_ref[...]
        h = jnp.maximum(h, 0.0)          # actfnc = 'relu' after every Linear
        # dp_h dropout: identity at inference
    o_ref[...] = h.astype(o_ref.dtype)   # single lane-dense full-tile store


def feed_forward(x, params, *, tm=None):
    """x: (B, S, D_IN) -> (B, S, DIMS[-1]); params: [(w, b), ...], w:(d_in,d_out), b:(1,d_out)."""
    b, s, d_in = x.shape
    n = b * s
    if tm is None:
        tm = n if n <= 256 else 256      # one grid step at small N; >=256 MXU rows at scale
    assert n % tm == 0 and tm % 8 == 0
    d_out = params[-1][0].shape[1]

    flat_params = []
    weight_specs = []
    for w, bias in params:
        flat_params += [w, bias]
        # whole-array, resident in VMEM: loaded once, never re-streamed per grid step
        weight_specs += [pl.BlockSpec(memory_space=pltpu.MemorySpace.VMEM)] * 2

    out = pl.pallas_call(
        ffnn_kernel,
        out_shape=jax.ShapeDtypeStruct((n, d_out), x.dtype),
        grid_spec=pltpu.PrefetchScalarGridSpec(
            num_scalar_prefetch=0,
            grid=(n // tm,),
            in_specs=[pl.BlockSpec((tm, d_in), lambda i: (i, 0))] + weight_specs,
            out_specs=pl.BlockSpec((tm, d_out), lambda i: (i, 0)),
        ),
        compiler_params=pltpu.CompilerParams(
            dimension_semantics=("parallel",),       # shards row-tiles across TCs on v7x at scale
            vmem_limit_bytes=32 * 1024 * 1024,
        ),
    )(x.reshape(n, d_in), *flat_params)
    return out.reshape(b, s, d_out)


def reference(x, params):
    """Plain-JAX reference matching the PyTorch 'ffnn' FeedForward (eval mode)."""
    h = x
    for w, bias in params:
        h = jnp.matmul(h, w, precision=jax.lax.Precision.HIGHEST) + bias
        h = jax.nn.relu(h)
    return h


if __name__ == "__main__":
    key = jax.random.PRNGKey(0)
    kx, kw1, kb1, kw2, kb2 = jax.random.split(key, 5)

    x = jax.random.normal(kx, (B, S, D_IN), jnp.float32)
    w1 = jax.random.normal(kw1, (D_IN, DIMS[0]), jnp.float32) * (D_IN ** -0.5)
    b1 = jax.random.normal(kb1, (1, DIMS[0]), jnp.float32) * 0.1
    w2 = jax.random.normal(kw2, (DIMS[0], DIMS[1]), jnp.float32) * (DIMS[0] ** -0.5)
    b2 = jax.random.normal(kb2, (1, DIMS[1]), jnp.float32) * 0.1
    params = [(w1, b1), (w2, b2)]

    out = feed_forward(x, params)
    out = jax.block_until_ready(out)

    ref = reference(x, params)
    assert out.shape == (B, S, DIMS[-1]), out.shape
    # tolerance covers in-kernel MXU f32 accumulation vs. XLA's default f32 dot passes
    assert jnp.allclose(out, ref, atol=5e-3, rtol=5e-3), float(jnp.abs(out - ref).max())

    print("KERNEL_OK")
</pallas_src>

<mosaic_0001>
module attributes {stable_mosaic.version = 11 : i64} {
  func.func @ffnn_kernel(%arg0: i32, %arg1: memref<16x128xf32, #tpu.memory_space<vmem>>, %arg2: memref<128x256xf32, #tpu.memory_space<vmem>>, %arg3: memref<1x256xf32, #tpu.memory_space<vmem>>, %arg4: memref<256x128xf32, #tpu.memory_space<vmem>>, %arg5: memref<1x128xf32, #tpu.memory_space<vmem>>, %arg6: memref<16x128xf32, #tpu.memory_space<vmem>>) attributes {dimension_semantics = [#tpu.dimension_semantics<parallel>], iteration_bounds = array<i64: 1>, scalar_prefetch = 0 : i64, scratch_operands = 0 : i64, tpu.core_type = #tpu.core_type<tc>, window_params = [{transform_indices = @transform_0, window_bounds = array<i64: 16, 128>}, {pipeline_mode = #tpu.pipeline_mode<synchronous>, transform_indices = @transform_1, window_bounds = array<i64: 128, 256>}, {pipeline_mode = #tpu.pipeline_mode<synchronous>, transform_indices = @transform_2, window_bounds = array<i64: 1, 256>}, {pipeline_mode = #tpu.pipeline_mode<synchronous>, transform_indices = @transform_3, window_bounds = array<i64: 256, 128>}, {pipeline_mode = #tpu.pipeline_mode<synchronous>, transform_indices = @transform_4, window_bounds = array<i64: 1, 128>}, {transform_indices = @transform_5, window_bounds = array<i64: 16, 128>}]} {
    %c0 = arith.constant 0 : index
    %c0_0 = arith.constant 0 : index
    %0 = vector.load %arg1[%c0, %c0_0] : memref<16x128xf32, #tpu.memory_space<vmem>>, vector<16x128xf32>
    %c0_1 = arith.constant 0 : index
    %c0_2 = arith.constant 0 : index
    %1 = vector.load %arg2[%c0_1, %c0_2] : memref<128x256xf32, #tpu.memory_space<vmem>>, vector<128x256xf32>
    %cst = arith.constant dense<0.000000e+00> : vector<16x256xf32>
    %2 = tpu.matmul %0, %1, %cst {dimension_numbers = #tpu.dot_dimension_numbers<[1], [0], [0], [1], [0, 0, 1, 1], [], []>} : vector<16x128xf32>, vector<128x256xf32>, vector<16x256xf32> -> vector<16x256xf32>
    %c0_3 = arith.constant 0 : index
    %c0_4 = arith.constant 0 : index
    %3 = vector.load %arg3[%c0_3, %c0_4] : memref<1x256xf32, #tpu.memory_space<vmem>>, vector<1x256xf32>
    %4 = vector.broadcast %3 : vector<1x256xf32> to vector<16x256xf32>
    %5 = arith.addf %2, %4 : vector<16x256xf32>
    %cst_5 = arith.constant 0.000000e+00 : f32
    %6 = vector.broadcast %cst_5 : f32 to vector<16x256xf32>
    %7 = arith.maximumf %5, %6 : vector<16x256xf32>
    %c0_6 = arith.constant 0 : index
    %c0_7 = arith.constant 0 : index
    %8 = vector.load %arg4[%c0_6, %c0_7] : memref<256x128xf32, #tpu.memory_space<vmem>>, vector<256x128xf32>
    %cst_8 = arith.constant dense<0.000000e+00> : vector<16x128xf32>
    %9 = tpu.matmul %7, %8, %cst_8 {dimension_numbers = #tpu.dot_dimension_numbers<[1], [0], [0], [1], [0, 0, 1, 1], [], []>} : vector<16x256xf32>, vector<256x128xf32>, vector<16x128xf32> -> vector<16x128xf32>
    %c0_9 = arith.constant 0 : index
    %c0_10 = arith.constant 0 : index
    %10 = vector.load %arg5[%c0_9, %c0_10] : memref<1x128xf32, #tpu.memory_space<vmem>>, vector<1x128xf32>
    %11 = vector.broadcast %10 : vector<1x128xf32> to vector<16x128xf32>
    %12 = arith.addf %9, %11 : vector<16x128xf32>
    %cst_11 = arith.constant 0.000000e+00 : f32
    %13 = vector.broadcast %cst_11 : f32 to vector<16x128xf32>
    %14 = arith.maximumf %12, %13 : vector<16x128xf32>
    %c0_12 = arith.constant 0 : index
    %c0_13 = arith.constant 0 : index
    %15 = vector.load %arg6[%c0_12, %c0_13] : memref<16x128xf32, #tpu.memory_space<vmem>>, vector<16x128xf32>
    tpu.vector_store %arg6[%c0_12, %c0_13], %14 {strides = array<i32>} : memref<16x128xf32, #tpu.memory_space<vmem>>, vector<16x128xf32>,
    return
  }
  func.func @transform_0(%arg0: i32) -> (i32, i32) {
    %c0_i32 = arith.constant 0 : i32
    %c0_i32_0 = arith.constant 0 : i32
    return %arg0, %c0_i32 : i32, i32
  }
  func.func @transform_1(%arg0: i32) -> (i32, i32) {
    %c0_i32 = arith.constant 0 : i32
    %c0_i32_0 = arith.constant 0 : i32
    %c0_i32_1 = arith.constant 0 : i32
    return %c0_i32, %c0_i32_0 : i32, i32
  }
  func.func @transform_2(%arg0: i32) -> (i32, i32) {
    %c0_i32 = arith.constant 0 : i32
    %c0_i32_0 = arith.constant 0 : i32
    %c0_i32_1 = arith.constant 0 : i32
    return %c0_i32, %c0_i32_0 : i32, i32
  }
  func.func @transform_3(%arg0: i32) -> (i32, i32) {
    %c0_i32 = arith.constant 0 : i32
    %c0_i32_0 = arith.constant 0 : i32
    %c0_i32_1 = arith.constant 0 : i32
    return %c0_i32, %c0_i32_0 : i32, i32
  }
  func.func @transform_4(%arg0: i32) -> (i32, i32) {
    %c0_i32 = arith.constant 0 : i32
    %c0_i32_0 = arith.constant 0 : i32
    %c0_i32_1 = arith.constant 0 : i32
    return %c0_i32, %c0_i32_0 : i32, i32
  }
  func.func @transform_5(%arg0: i32) -> (i32, i32) {
    %c0_i32 = arith.constant 0 : i32
    %c0_i32_0 = arith.constant 0 : i32
    return %arg0, %c0_i32 : i32, i32
  }
}

</mosaic_0001>

<bundles_post_ra>
// kernel: tpu_custom_call.1
= control target key start
LH: loop header
LB: loop body
LE: loop exit
PB: predicated region body
PF: predicated region fallthrough
CT: control target
= control target key end

     0   :  { %10 = vsyncpa [#allocation3], 0  ;;  %s635_s0 = inlined_call_operand.hbm [shape: f32[16,128], index: 0, kind: input, shape index: {}]   ;;  %s636_s1 = inlined_call_operand.hbm [shape: f32[128,256], index: 1, kind: input, shape index: {}]   ;;  %s637_s2 = inlined_call_operand.vmem [shape: f32[1,256], index: 2, kind: input, shape index: {}]   ;;  %s638_s3 = inlined_call_operand.hbm [shape: f32[256,128], index: 3, kind: input, shape index: {}]   ;;  %s639_s4 = inlined_call_operand.vmem [shape: f32[1,128], index: 4, kind: input, shape index: {}]   ;;  %s640_s5 = inlined_call_operand.hbm [shape: f32[16,128], index: 5, kind: output, shape index: {}]  }
   0x1   :  { %11 = vsyncpa [#allocation6], 0 }
   0x2   :  { %12 = vsyncpa [#allocation4], 0  ;;  %s531_s18 = smov [#allocation5]   ;;  %s437_s22 = scalar_lea.hbm %s636_s1, 4096 }
   0x3   :  { %s30_s19 = sshll.u32 %s531_s18, 4  ;;  %p438_p0 = scmp.ne.s32.totalorder %s636_s1, %s437_s22  ;;  %s31_s19 = int_to_ptr.vmem [resolvable:$true] %s30_s19 }
   0x4   :  { %p441_p1 = scmp.lt.u32.totalorder %s437_s22, %s636_s1 }
   0x6   :  { %p443_p2 = pnand %p441_p1, %p438_p0 }
   0x8   :  { %446 = shalt.err (!%p443_p2)
}
   0x9   :  { %s447_s27 = scalar_lea.vmem %s31_s19, 4096  ;;  %p452_p4 = scmp.lt.s32.totalorder %s31_s19, %s31_s19 }
   0xa   :  { %p448_p3 = scmp.ne.s32.totalorder %s31_s19, %s447_s27  ;;  %p453_p5 = scmp.lt.s32.totalorder %s447_s27, %s447_s27 }
   0xc   :  { %p454_p6 = por %p453_p5, %p452_p4 }
   0xe   :  { %p455_p7 = pnand %p454_p6, %p448_p3 }
  0x10   :  { %458 = shalt.err (!%p455_p7)
}
  0x11   :  { %s532_s28 = smov 256   ;;  %s533_s29 = smov 16  }
  0x12   :  { %36 = dma.hbm_to_vmem [thread:$0]  %s636_s1, 4096, %s31_s19, [#allocation6], %s532_s28, %s532_s28, %s533_s29  }
  0x13   :  { %s534_s7 = smov [#allocation2]   ;;  %s459_s11 = scalar_lea.hbm %s635_s0, 256 }
  0x14   :  { %s18_s8 = sshll.u32 %s534_s7, 4  ;;  %p460_p8 = scmp.ne.s32.totalorder %s635_s0, %s459_s11  ;;  %s19_s8 = int_to_ptr.vmem [resolvable:$true] %s18_s8 }
  0x15   :  { %p463_p9 = scmp.lt.u32.totalorder %s459_s11, %s635_s0 }
  0x17   :  { %p465_p10 = pnand %p463_p9, %p460_p8 }
  0x19   :  { %468 = shalt.err (!%p465_p10)
}
  0x1a   :  { %s469_s16 = scalar_lea.vmem %s19_s8, 256  ;;  %p474_p12 = scmp.lt.s32.totalorder %s19_s8, %s19_s8 }
  0x1b   :  { %p470_p11 = scmp.ne.s32.totalorder %s19_s8, %s469_s16  ;;  %p475_p13 = scmp.lt.s32.totalorder %s469_s16, %s469_s16 }
  0x1d   :  { %p476_p0 = por %p475_p13, %p474_p12 }
  0x1f   :  { %p477_p1 = pnand %p476_p0, %p470_p11 }
  0x21   :  { %480 = shalt.err (!%p477_p1)
}
  0x22   :  { %s535_s1 = smov 128   ;;  %s536_s17 = smov 8  }
  0x23   :  { %24 = dma.hbm_to_vmem [thread:$0]  %s635_s0, 256, %s19_s8, [#allocation3], %s535_s1, %s535_s1, %s536_s17  }
  0x24   :  { %s537_s20 = smov [#allocation7]   ;;  %s481_s24 = scalar_lea.hbm %s638_s3, 4096 }
  0x25   :  { %s44_s21 = sshll.u32 %s537_s20, 4  ;;  %p482_p2 = scmp.ne.s32.totalorder %s638_s3, %s481_s24  ;;  %s45_s21 = int_to_ptr.vmem [resolvable:$true] %s44_s21 }
  0x26   :  { %p485_p3 = scmp.lt.u32.totalorder %s481_s24, %s638_s3 }
  0x28   :  { %p487_p4 = pnand %p485_p3, %p482_p2 }
  0x2a   :  { %490 = shalt.err (!%p487_p4)
}
  0x2b   :  { %s491_s29 = scalar_lea.vmem %s45_s21, 4096  ;;  %p496_p6 = scmp.lt.s32.totalorder %s45_s21, %s45_s21 }
  0x2c   :  { %p492_p5 = scmp.ne.s32.totalorder %s45_s21, %s491_s29  ;;  %p497_p7 = scmp.lt.s32.totalorder %s491_s29, %s491_s29 }
  0x2e   :  { %p498_p8 = por %p497_p7, %p496_p6 }
  0x30   :  { %p499_p9 = pnand %p498_p8, %p492_p5 }
  0x32   :  { %502 = shalt.err (!%p499_p9)
}
  0x33   :  { %50 = dma.hbm_to_vmem [thread:$0]  %s638_s3, 4096, %s45_s21, [#allocation6], %s535_s1, %s535_s1, %s536_s17  }
  0x34   :  { %525 = dma.done.wait [#allocation3], 256  }
  0x35   :  { %526 = vsyncadd [#allocation3], 4294967040 }
  0x36   :  { %527 = dma.done.wait [#allocation6], 8192  }
  0x37   :  { %528 = vsyncadd [#allocation6], 4294959104  ;;  %v538_v0 = vmov 0.0   ;;  %v65_v1 = vld [vmem:[#allocation5 + $0x8] sm:$0xff]  ;;  %v67_v2 = vld [vmem:[#allocation5 + $0x18] sm:$0xff]  ;;  %s539_s8 = smov [#allocation8]  }
  0x38   :  { %172 = vmatprep.mubr.f32.mxu0 %v538_v0  ;;  %v64_v3 = vld [vmem:[#allocation5] sm:$0xff]  ;;  %v364_v4 = vpack.c.bf16 %v67_v2, %v65_v1  ;;  %v66_v5 = vld [vmem:[#allocation5 + $0x10] sm:$0xff]  ;;  %v69_v6 = vld [vmem:[#allocation5 + $0x28] sm:$0xff]  ;;  %s312_s9 = sshll.u32 %s539_s8, 4  ;;  %s313_s9 = int_to_ptr.vmem [resolvable:$true] %s312_s9 }
  0x39   :  { %v71_v7 = vld [vmem:[#allocation5 + $0x38] sm:$0xff]  ;;  %v366_v8 = vpack.c.bf16 %v66_v5, %v64_v3  ;;  %v68_v10 = vld [vmem:[#allocation5 + $0x20] sm:$0xff]  ;;  %v70_v11 = vld [vmem:[#allocation5 + $0x30] sm:$0xff]  ;;  %s503_s10 = scalar_lea.vmem %s313_s9, 256  ;;  %p508_p11 = scmp.lt.s32.totalorder %s313_s9, %s313_s9 }
  0x3a   :  { %v368_v9 = vpack.c.bf16 %v71_v7, %v69_v6  ;;  %v73_v12 = vld [vmem:[#allocation5 + $0x48] sm:$0xff]  ;;  %365 = vmatprep.subr.bf16.mxu0 %v364_v4  ;;  %v75_v13 = vld [vmem:[#allocation5 + $0x58] sm:$0xff]  ;;  %v370_v14 = vpack.c.bf16 %v70_v11, %v68_v10  ;;  %v72_v16 = vld [vmem:[#allocation5 + $0x40] sm:$0xff]  ;;  %p504_p10 = scmp.ne.s32.totalorder %s313_s9, %s503_s10  ;;  %p509_p12 = scmp.lt.s32.totalorder %s503_s10, %s503_s10 }
  0x3b   :  { %367 = vmatpush1.bf16.msra.mxu0 %v366_v8  ;;  %v372_v15 = vpack.c.bf16 %v75_v13, %v73_v12  ;;  %v74_v17 = vld [vmem:[#allocation5 + $0x50] sm:$0xff]  ;;  %v77_v18 = vld [vmem:[#allocation5 + $0x68] sm:$0xff]  ;;  %v79_v19 = vld [vmem:[#allocation5 + $0x78] sm:$0xff] }
  0x3c   :  { %369 = vmatprep.subr.bf16.mxu0 %v368_v9  ;;  %v374_v20 = vpack.c.bf16 %v74_v17, %v72_v16  ;;  %v376_v21 = vpack.c.bf16 %v79_v19, %v77_v18  ;;  %v76_v22 = vld [vmem:[#allocation5 + $0x60] sm:$0xff]  ;;  %v78_v23 = vld [vmem:[#allocation5 + $0x70] sm:$0xff]  ;;  %v81_v24 = vld [vmem:[#allocation5 + $0x88] sm:$0xff]  ;;  %p510_p13 = por %p509_p12, %p508_p11 }
  0x3d   :  { %v83_v25 = vld [vmem:[#allocation5 + $0x98] sm:$0xff]  ;;  %v80_v26 = vld [vmem:[#allocation5 + $0x80] sm:$0xff]  ;;  %v82_v27 = vld [vmem:[#allocation5 + $0x90] sm:$0xff]  ;;  %v378_v30 = vpack.c.bf16 %v78_v23, %v76_v22 }
  0x3e   :  { %v205_v28 = vld [vmem:[#allocation7 + $0x80] sm:$0xff]  ;;  %v206_v29 = vld [vmem:[#allocation7 + $0x88] sm:$0xff]  ;;  %v207_v35 = vld [vmem:[#allocation7 + $0x90] sm:$0xff]  ;;  %v380_v36 = vpack.c.bf16 %v83_v25, %v81_v24  ;;  %v382_v46 = vpack.c.bf16 %v82_v27, %v80_v26  ;;  %p511_p0 = pnand %p510_p13, %p504_p10 }
  0x3f   :  { %371 = vmatpush1.bf16.msra.mxu0 %v370_v14  ;;  %v85_v31 = vld [vmem:[#allocation5 + $0xa8] sm:$0xff]  ;;  %v396_v32 = vpack.c.bf16 %v206_v29, %v205_v28  ;;  %v189_v33 = vld [vmem:[#allocation7] sm:$0xff]  ;;  %v208_v38 = vld [vmem:[#allocation7 + $0x98] sm:$0xff] }
  0x40   :  { %373 = vmatprep.subr.bf16.mxu0 %v372_v15  ;;  %v190_v34 = vld [vmem:[#allocation7 + $0x8] sm:$0xff]  ;;  %v191_v39 = vld [vmem:[#allocation7 + $0x10] sm:$0xff]  ;;  %v192_v40 = vld [vmem:[#allocation7 + $0x18] sm:$0xff]  ;;  %v400_v42 = vpack.c.bf16 %v208_v38, %v207_v35 }
  0x41   :  { %v398_v37 = vpack.c.bf16 %v190_v34, %v189_v33  ;;  %v87_v41 = vld [vmem:[#allocation5 + $0xb8] sm:$0xff]  ;;  %397 = vmatprep.subr.bf16.mxu1 %v396_v32  ;;  %v209_v43 = vld [vmem:[#allocation7 + $0xa0] sm:$0xff]  ;;  %v210_v44 = vld [vmem:[#allocation7 + $0xa8] sm:$0xff]  ;;  %v402_v45 = vpack.c.bf16 %v192_v40, %v191_v39 }
  0x42   :  { %v84_v47 = vld [vmem:[#allocation5 + $0xa0] sm:$0xff]  ;;  %v404_v48 = vpack.c.bf16 %v210_v44, %v209_v43  ;;  %v194_v50 = vld [vmem:[#allocation7 + $0x28] sm:$0xff]  ;;  %v384_v51 = vpack.c.bf16 %v87_v41, %v85_v31  ;;  %v86_v52 = vld [vmem:[#allocation5 + $0xb0] sm:$0xff] }
  0x43   :  { %375 = vmatpush1.bf16.msra.mxu0 %v374_v20  ;;  %399 = vmatpush3.bf16.msra.mxu1 %v398_v37  ;;  %v193_v49 = vld [vmem:[#allocation7 + $0x20] sm:$0xff]  ;;  %v211_v53 = vld [vmem:[#allocation7 + $0xb0] sm:$0xff]  ;;  %v212_v54 = vld [vmem:[#allocation7 + $0xb8] sm:$0xff]  ;;  %v386_v58 = vpack.c.bf16 %v86_v52, %v84_v47 }
  0x44   :  { %377 = vmatprep.subr.bf16.mxu0 %v376_v21  ;;  %401 = vmatprep.subr.bf16.mxu1 %v400_v42  ;;  %v89_v55 = vld [vmem:[#allocation5 + $0xc8] sm:$0xff]  ;;  %v91_v56 = vld [vmem:[#allocation5 + $0xd8] sm:$0xff]  ;;  %v406_v57 = vpack.c.bf16 %v194_v50, %v193_v49  ;;  %v88_v59 = vld [vmem:[#allocation5 + $0xc0] sm:$0xff]  ;;  %v408_v60 = vpack.c.bf16 %v212_v54, %v211_v53 }
  0x45   :  { %v195_v61 = vld [vmem:[#allocation7 + $0x30] sm:$0xff]  ;;  %v196_v62 = vld [vmem:[#allocation7 + $0x38] sm:$0xff]  ;;  %v388_v63 = vpack.c.bf16 %v91_v56, %v89_v55  ;;  %v213_v2 = vld [vmem:[#allocation7 + $0xc0] sm:$0xff] }
  0x46   :  { %v90_v1 = vld [vmem:[#allocation5 + $0xd0] sm:$0xff]  ;;  %v214_v3 = vld [vmem:[#allocation7 + $0xc8] sm:$0xff]  ;;  %v95_v5 = vld [vmem:[#allocation5 + $0xf8] sm:$0xff]  ;;  %v410_v6 = vpack.c.bf16 %v196_v62, %v195_v61 }
  0x47   :  { %379 = vmatpush1.bf16.msra.mxu0 %v378_v30  ;;  %403 = vmatpush3.bf16.msra.mxu1 %v402_v45  ;;  %v93_v4 = vld [vmem:[#allocation5 + $0xe8] sm:$0xff]  ;;  %v390_v7 = vpack.c.bf16 %v90_v1, %v88_v59  ;;  %v92_v8 = vld [vmem:[#allocation5 + $0xe0] sm:$0xff]  ;;  %v412_v9 = vpack.c.bf16 %v214_v3, %v213_v2  ;;  %v94_v13 = vld [vmem:[#allocation5 + $0xf0] sm:$0xff] }
  0x48   :  { %381 = vmatprep.subr.bf16.mxu0 %v380_v36  ;;  %405 = vmatprep.subr.bf16.mxu1 %v404_v48  ;;  %v197_v10 = vld [vmem:[#allocation7 + $0x40] sm:$0xff]  ;;  %v198_v11 = vld [vmem:[#allocation7 + $0x48] sm:$0xff]  ;;  %v392_v12 = vpack.c.bf16 %v95_v5, %v93_v4  ;;  %v215_v14 = vld [vmem:[#allocation7 + $0xd0] sm:$0xff]  ;;  %v394_v17 = vpack.c.bf16 %v94_v13, %v92_v8  ;;  %v98_v36 = vlaneseq }
  0x49   :  { %v216_v15 = vld [vmem:[#allocation7 + $0xd8] sm:$0xff]  ;;  %v414_v16 = vpack.c.bf16 %v198_v11, %v197_v10  ;;  %v199_v19 = vld [vmem:[#allocation7 + $0x50] sm:$0xff]  ;;  %v217_v21 = vld [vmem:[#allocation7 + $0xe0] sm:$0xff] }
  0x4a   :  { %v416_v18 = vpack.c.bf16 %v216_v15, %v215_v14  ;;  %v200_v20 = vld [vmem:[#allocation7 + $0x58] sm:$0xff]  ;;  %v218_v22 = vld [vmem:[#allocation7 + $0xe8] sm:$0xff]  ;;  %v62_v24 = vld [vmem:[#allocation2] sm:$0xff]  ;;  %v99_v37 = vshrl.u32 %v98_v36, 7 }
  0x4b   :  { %383 = vmatpush1.bf16.msra.mxu0 %v382_v46  ;;  %407 = vmatpush3.bf16.msra.mxu1 %v406_v57  ;;  %v418_v23 = vpack.c.bf16 %v200_v20, %v199_v19  ;;  %v420_v25 = vpack.c.bf16 %v218_v22, %v217_v21  ;;  %v63_v26 = vld [vmem:[#allocation2 + $0x8] sm:$0xff]  ;;  %v201_v27 = vld [vmem:[#allocation7 + $0x60] sm:$0xff]  ;;  %v202_v28 = vld [vmem:[#allocation7 + $0x68] sm:$0xff] }
  0x4c   :  { %385 = vmatprep.subr.bf16.mxu0 %v384_v51  ;;  %409 = vmatprep.subr.bf16.mxu1 %v408_v60  ;;  %v422_v29 = vpack.c.bf16 %v202_v28, %v201_v27  ;;  %v219_v30 = vld [vmem:[#allocation7 + $0xf0] sm:$0xff]  ;;  %v220_v31 = vld [vmem:[#allocation7 + $0xf8] sm:$0xff]  ;;  %v100_v38 = vsub.s32 0, %v99_v37  ;;  %v104_v39 = vsub.s32 1, %v99_v37 }
  0x4d   :  { %v424_v32 = vpack.c.bf16 %v220_v31, %v219_v30  ;;  %v203_v33 = vld [vmem:[#allocation7 + $0x70] sm:$0xff]  ;;  %v204_v34 = vld [vmem:[#allocation7 + $0x78] sm:$0xff] }
  0x4e   :  { %v426_v35 = vpack.c.bf16 %v204_v34, %v203_v33  ;;  %v325_v55 = vld [vmem:[%s639_s4] ss:$0 sm:$0xff] }
  0x4f   :  { %387 = vmatpush1.bf16.msra.mxu0 %v386_v58  ;;  %411 = vmatpush3.bf16.msra.mxu1 %v410_v6 }
  0x50   :  { %389 = vmatprep.subr.bf16.mxu0 %v388_v63  ;;  %413 = vmatprep.subr.bf16.mxu1 %v412_v9 }
  0x53   :  { %391 = vmatpush1.bf16.msra.mxu0 %v390_v7  ;;  %415 = vmatpush3.bf16.msra.mxu1 %v414_v16 }
  0x54   :  { %393 = vmatprep.subr.bf16.mxu0 %v392_v12  ;;  %417 = vmatprep.subr.bf16.mxu1 %v416_v18 }
  0x57   :  { %395 = vmatpush1.bf16.msra.mxu0 %v394_v17  ;;  %419 = vmatpush3.bf16.msra.mxu1 %v418_v23 }
  0x58   :  { %421 = vmatprep.subr.bf16.mxu1 %v420_v25 }
  0x5a   :  { %173 = vmatmul.mubr.f32.vlgmr.msra.gmra.mrb[0].mxu0 %v62_v24 }
  0x5b   :  { %178 = vmatprep.mubr.f32.mxu0 %v538_v0  ;;  %423 = vmatpush3.bf16.msra.mxu1 %v422_v29  ;;  %v96_v0 = vld [vmem:[%s637_s2] sm:$0x3] }
  0x5c   :  { %425 = vmatprep.subr.bf16.mxu1 %v424_v32  ;;  %v101_v40 = vrot.slane %v96_v0, %v100_v38  ;;  %v105_v41 = vrot.slane %v96_v0, %v104_v39 }
  0x5e   :  { %179 = vmatmul.mubr.f32.gmra.mrb[2].mxu0 %v63_v26 }
  0x5f   :  { %427 = vmatpush3.bf16.msra.mxu1 %v426_v35 }
 0x12d   :  { %v174_v42 = vpop.f32.mrb[0].mxu0 }
 0x12e   :  { %v175_v43 = vadd.f32 %v174_v42, %v101_v40  ;;  %v176_v44 = vpop.f32.mrb[1].mxu0 }
 0x12f   :  { %v177_v45 = vadd.f32 %v176_v44, %v105_v41 }
 0x130   :  { %v185_v48 = vmax.f32 %v175_v43, 0.0 }
 0x131   :  { %v180_v46 = vpop.f32.mrb[2].mxu0  ;;  %v186_v47 = vmax.f32 %v177_v45, 0.0 }
 0x132   :  { %v181_v49 = vadd.f32 %v180_v46, %v101_v40  ;;  %v182_v50 = vpop.f32.mrb[3].mxu0 }
 0x133   :  { %v183_v51 = vadd.f32 %v182_v50, %v105_v41  ;;  %292 = vmatprep.mubr.f32.mxu1 %v186_v47 }
 0x134   :  { %293 = vmatmul.mubr.f32.vlgmr.msra.gmra.mrb[0].mxu1 %v185_v48  ;;  %v187_v53 = vmax.f32 %v181_v49, 0.0 }
 0x135   :  { %v188_v52 = vmax.f32 %v183_v51, 0.0 }
 0x137   :  { %297 = vmatprep.mubr.f32.mxu1 %v188_v52 }
 0x138   :  { %298 = vmatmul.mubr.f32.gmra.mrb[2].mxu1 %v187_v53 }
 0x207   :  { %v358_v54 = vpop.f32.mrb[0].mxu1 }
 0x208   :  { %v359_v56 = vpop.f32.mrb[1].mxu1 }
 0x209   :  { %v360_v57 = vadd.f32 %v359_v56, %v358_v54 }
 0x20b   :  { %v295_v58 = vadd.f32 %v360_v57, %v325_v55  ;;  %v361_v59 = vpop.f32.mrb[2].mxu1 }
 0x20c   :  { %v362_v60 = vpop.f32.mrb[3].mxu1 }
 0x20d   :  { %v303_v61 = vmax.f32 %v295_v58, 0.0  ;;  %v363_v62 = vadd.f32 %v362_v60, %v361_v59 }
 0x20f   :  { %305 = vst [vmem:[#allocation8] sm:$0xff] %v303_v61  ;;  %v300_v63 = vadd.f32 %v363_v62, %v325_v55 }
 0x211   :  { %v304_v1 = vmax.f32 %v300_v63, 0.0 }
 0x213   :  { %306 = vst [vmem:[#allocation8 + $0x8] sm:$0xff] %v304_v1 }
 0x214   :  { %514 = shalt.err (!%p511_p0)
}
 0x215   :  { %s515_s12 = scalar_lea.hbm %s640_s5, 256 }
 0x216   :  { %p516_p1 = scmp.ne.s32.totalorder %s640_s5, %s515_s12  ;;  %p519_p2 = scmp.lt.u32.totalorder %s515_s12, %s640_s5 }
 0x218   :  { %p521_p3 = pnand %p519_p2, %p516_p1 }
 0x21a   :  { %524 = shalt.err (!%p521_p3)
}
 0x21b   :  { %318 = dma.vmem_to_hbm [thread:$0]  %s313_s9, 256, %s640_s5, [#allocation4], %s535_s1, %s535_s1, %s536_s17  }
 0x21c   :  { %529 = dma.done.wait [#allocation4], 256  }
 0x21d   :  { %530 = vsyncadd [#allocation4], 4294967040 }
 0x21e   :  { %322 = vsyncpa [#allocation3], 1 }
 0x21f   :  { %323 = vsyncpa [#allocation6], 1 }
 0x220   :  { %324 = vsyncpa [#allocation4], 1 }

</bundles_post_ra>
